<compile_context>
chip_gen: v5e
topology: v5e:2x2
jax: 0.10.0
libtpu: 0.0.40
codegen_flags: <defaults>
</compile_context>

<pallas_src>
import math

import jax
import jax.numpy as jnp
from jax.experimental import pallas as pl
from jax.experimental.pallas import tpu as pltpu

_COLS = 512                      # lane-dense last dim (multiple of 128, >= 512)
_TARGET_TILE_BYTES = 4 << 20     # ~4 MiB tiles (roofline knee on v5e/v6e/v7x)
_MIN_TILE_BYTES = 1 << 20        # never shrink a tile below ~1 MiB
_MIN_PALLAS_ELEMS = 2048         # below this, plain fused XLA is faster
                                 # (tune higher in production; kept small here
                                 #  so the demo exercises the Pallas path)


def _memory_kernel(params_ref, t_ref, o_ref):
    # params_ref: SMEM (3,) float32 -> [mu, coef, inv_norm]
    mu = params_ref[0]
    coef = params_ref[1]        # -0.5 / sigma^2   (no per-element divide)
    inv_norm = params_ref[2]    # 1 / (sigma * sqrt(2*pi))
    z = t_ref[...].astype(jnp.float32) - mu
    o_ref[...] = (inv_norm * jnp.exp(coef * (z * z))).astype(o_ref.dtype)


def _round_up(x, m):
    return ((x + m - 1) // m) * m


def _num_tensorcores():
    """2 on a v7x-style megacore chip, else 1.  Best-effort."""
    try:
        kind = jax.devices()[0].device_kind.lower()
    except Exception:
        return 1
    return 2 if ("v7" in kind or "7x" in kind) else 1


def _sublane_multiple(dtype):
    itemsize = jnp.dtype(dtype).itemsize
    return max(8, 32 // itemsize)      # f32 -> 8, bf16/f16 -> 16, int8 -> 32


def _choose_block_rows(rows, cols, dtype, num_cores):
    """Rows per block: ~4 MiB tiles, >= 1 MiB, sublane-aligned; on a
    2-TensorCore chip aim for >= 2 grid steps per core when the array is
    large enough."""
    sub = _sublane_multiple(dtype)
    row_bytes = cols * jnp.dtype(dtype).itemsize
    br = max(sub, (_TARGET_TILE_BYTES // row_bytes) // sub * sub)
    if num_cores > 1:
        min_br = max(sub, (_MIN_TILE_BYTES // row_bytes) // sub * sub)
        steps = 2 * num_cores
        br_for_steps = _round_up(pl.cdiv(rows, steps), sub)
        br = min(br, max(min_br, br_for_steps))
    if br >= rows:
        return rows                    # single block == full dim (always legal)
    return br


def memory_reference(t, mu, sigma):
    return 1.0 / (sigma * (2.0 * math.pi) ** 0.5) * jnp.exp(
        -0.5 * (t - mu) ** 2 / sigma ** 2)


def memory_forward(t, mu, sigma, *, _force_block_rows=None):
    """Apply the Memory module's Gaussian PDF elementwise to `t` (any shape)."""
    t = jnp.asarray(t)
    orig_shape = t.shape
    n = int(t.size)

    # I/O dtype: run 16/32-bit floats natively end-to-end; everything else is
    # promoted to f32 (matching the PyTorch module, whose params are float).
    if t.dtype in (jnp.float32, jnp.bfloat16, jnp.float16):
        io_dtype = t.dtype
    else:
        io_dtype = jnp.dtype(jnp.float32)
        t = t.astype(io_dtype)

    mu32 = jnp.asarray(mu, jnp.float32)
    sigma32 = jnp.asarray(sigma, jnp.float32)

    # Tiny inputs: fixed pallas_call launch/DMA overhead dwarfs the work.
    if n < _MIN_PALLAS_ELEMS:
        out = memory_reference(t.astype(jnp.float32), mu32, sigma32)
        return out.astype(io_dtype)

    # Hoist all scalar math out of the per-element expression.
    coef = -0.5 / (sigma32 * sigma32)
    inv_norm = 1.0 / (sigma32 * jnp.sqrt(jnp.float32(2.0 * math.pi)))
    params = jnp.stack([mu32, coef, inv_norm])

    # Lane-dense 2-D layout: (rows, 512).  Pad ONLY to a multiple of 512 (and
    # not at all when n already is one); the ragged last row-block is handled
    # by Pallas' edge masking, not by padding.
    cols = _COLS
    rows = pl.cdiv(n, cols)
    padded_n = rows * cols

    flat = t.reshape(-1)
    if padded_n != n:
        flat = jnp.pad(flat, (0, padded_n - n))
    t2d = flat.reshape(rows, cols)

    num_cores = _num_tensorcores()
    block_rows = (_force_block_rows if _force_block_rows is not None
                  else _choose_block_rows(rows, cols, io_dtype, num_cores))
    block_rows = min(block_rows, rows)

    grid = (pl.cdiv(rows, block_rows),)
    itemsize = jnp.dtype(io_dtype).itemsize
    tile_bytes = block_rows * cols * itemsize
    # in + out, double-buffered, plus headroom; <= ~20 MiB with 4 MiB tiles,
    # safely inside every generation's scoped-VMEM budget.
    vmem_limit = min(64 << 20, max(16 << 20, 4 * tile_bytes + (4 << 20)))

    out2d = pl.pallas_call(
        _memory_kernel,
        out_shape=jax.ShapeDtypeStruct((rows, cols), io_dtype),
        grid_spec=pl.GridSpec(
            grid=grid,
            in_specs=[
                pl.BlockSpec(memory_space=pltpu.SMEM),                # [mu, coef, inv_norm]
                pl.BlockSpec((block_rows, cols), lambda i: (i, 0)),   # t tile
            ],
            out_specs=pl.BlockSpec((block_rows, cols), lambda i: (i, 0)),
        ),
        compiler_params=pltpu.CompilerParams(
            dimension_semantics=("parallel",),
            vmem_limit_bytes=vmem_limit,
            allow_input_fusion=[False, True]),   # let XLA fuse pad/cast producer
    )(params, t2d)

    if padded_n != n:
        return out2d.reshape(-1)[:n].reshape(orig_shape)
    return out2d.reshape(orig_shape)


if __name__ == "__main__":
    # Deterministic parameter init, matching Memory.__init__
    mu = jnp.float32(4.5)
    sigma = jnp.float32(1.0)

    key = jax.random.PRNGKey(0)
    k1, k2, k3, k4 = jax.random.split(key, 4)

    # 1) f32, size a multiple of 512: no padding, single full-dim block.
    t1 = jax.random.uniform(k1, (4, 16, 96), dtype=jnp.float32,
                            minval=0.0, maxval=10.0)            # 6144 elems
    o1 = jax.block_until_ready(memory_forward(t1, mu, sigma))
    r1 = memory_reference(t1, mu, sigma)
    assert o1.shape == t1.shape and o1.dtype == jnp.float32
    assert jnp.allclose(o1, r1, rtol=1e-5, atol=1e-6), "mismatch (f32, no-pad path)"

    # 2) f32, ragged size (needs 512-pad) with a forced small block so the
    #    grid has >1 step and a partial last block (edge-masking path).
    t2 = jax.random.uniform(k2, (20, 500), dtype=jnp.float32,
                            minval=0.0, maxval=10.0)            # 10000 elems
    o2 = jax.block_until_ready(memory_forward(t2, mu, sigma, _force_block_rows=8))
    r2 = memory_reference(t2, mu, sigma)
    assert o2.shape == t2.shape and o2.dtype == jnp.float32
    assert jnp.allclose(o2, r2, rtol=1e-5, atol=1e-6), "mismatch (partial-block path)"

    # 3) bf16 native I/O path (half the HBM bytes; f32 math in-register).
    t3 = jax.random.uniform(k3, (8, 16, 48), dtype=jnp.float32,
                            minval=0.0, maxval=10.0).astype(jnp.bfloat16)  # 6144 elems
    o3 = jax.block_until_ready(memory_forward(t3, mu, sigma))
    assert o3.shape == t3.shape and o3.dtype == jnp.bfloat16
    r3 = memory_reference(t3.astype(jnp.float32), mu, sigma)
    assert jnp.allclose(o3.astype(jnp.float32), r3, rtol=2e-2, atol=2e-3), \
        "mismatch (bf16 path)"

    # 4) Tiny input: small-size XLA bypass.
    t4 = jax.random.uniform(k4, (8, 16), dtype=jnp.float32,
                            minval=0.0, maxval=10.0)
    o4 = jax.block_until_ready(memory_forward(t4, mu, sigma))
    r4 = memory_reference(t4, mu, sigma)
    assert jnp.allclose(o4, r4, rtol=1e-5, atol=1e-6), "mismatch (bypass path)"

    print("KERNEL_OK")
</pallas_src>

<mosaic_0001>
module attributes {stable_mosaic.version = 11 : i64} {
  func.func @_memory_kernel(%arg0: i32, %arg1: memref<3xf32, #tpu.memory_space<smem>>, %arg2: memref<12x512xf32, #tpu.memory_space<vmem>>, %arg3: memref<12x512xf32, #tpu.memory_space<vmem>>) attributes {dimension_semantics = [#tpu.dimension_semantics<parallel>], iteration_bounds = array<i64: 1>, scalar_prefetch = 0 : i64, scratch_operands = 0 : i64, tpu.core_type = #tpu.core_type<tc>, window_params = [{transform_indices = @transform_0, window_bounds = array<i64: 3>}, {transform_indices = @transform_1, window_bounds = array<i64: 12, 512>}, {transform_indices = @transform_2, window_bounds = array<i64: 12, 512>}]} {
    %c0 = arith.constant 0 : index
    %0 = memref.load %arg1[%c0] : memref<3xf32, #tpu.memory_space<smem>>
    %c1 = arith.constant 1 : index
    %1 = memref.load %arg1[%c1] : memref<3xf32, #tpu.memory_space<smem>>
    %c2 = arith.constant 2 : index
    %2 = memref.load %arg1[%c2] : memref<3xf32, #tpu.memory_space<smem>>
    %c0_0 = arith.constant 0 : index
    %c0_1 = arith.constant 0 : index
    %3 = vector.load %arg2[%c0_0, %c0_1] : memref<12x512xf32, #tpu.memory_space<vmem>>, vector<12x512xf32>
    %4 = vector.broadcast %0 : f32 to vector<12x512xf32>
    %5 = arith.subf %3, %4 : vector<12x512xf32>
    %6 = arith.mulf %5, %5 : vector<12x512xf32>
    %7 = vector.broadcast %1 : f32 to vector<12x512xf32>
    %8 = arith.mulf %7, %6 : vector<12x512xf32>
    %9 = math.exp %8 : vector<12x512xf32>
    %10 = vector.broadcast %2 : f32 to vector<12x512xf32>
    %11 = arith.mulf %10, %9 : vector<12x512xf32>
    %c0_2 = arith.constant 0 : index
    %c0_3 = arith.constant 0 : index
    %12 = vector.load %arg3[%c0_2, %c0_3] : memref<12x512xf32, #tpu.memory_space<vmem>>, vector<12x512xf32>
    tpu.vector_store %arg3[%c0_2, %c0_3], %11 {strides = array<i32>} : memref<12x512xf32, #tpu.memory_space<vmem>>, vector<12x512xf32>,
    return
  }
  func.func @transform_0(%arg0: i32) -> i32 {
    %c0_i32 = arith.constant 0 : i32
    %c0_i32_0 = arith.constant 0 : i32
    return %c0_i32 : i32
  }
  func.func @transform_1(%arg0: i32) -> (i32, i32) {
    %c0_i32 = arith.constant 0 : i32
    %c0_i32_0 = arith.constant 0 : i32
    return %arg0, %c0_i32 : i32, i32
  }
  func.func @transform_2(%arg0: i32) -> (i32, i32) {
    %c0_i32 = arith.constant 0 : i32
    %c0_i32_0 = arith.constant 0 : i32
    return %arg0, %c0_i32 : i32, i32
  }
}

</mosaic_0001>

<bundles_post_ra>
// kernel: tpu_custom_call.1
= control target key start
LH: loop header
LB: loop body
LE: loop exit
PB: predicated region body
PF: predicated region fallthrough
CT: control target
= control target key end

     0   :  { %7 = vsyncpa [#allocation5], 0  ;;  %s255_s0 = inlined_call_operand.hbm [shape: f32[3], index: 0, kind: input, shape index: {}]   ;;  %s256_s1 = inlined_call_operand.hbm [shape: f32[12,512], index: 1, kind: input, shape index: {}]   ;;  %s257_s2 = inlined_call_operand.hbm [shape: f32[12,512], index: 2, kind: output, shape index: {}]  }
   0x1   :  { %8 = vsyncpa [#allocation3], 0 }
   0x2   :  { %9 = vsyncpa [#allocation4], 0  ;;  %s15_s11 = sshll.u32 %s255_s0, 4  ;;  %s23_s14 = sshll.u32 %s256_s1, 4  ;;  %s16_s11 = int_to_ptr.hbm [resolvable:$true] %s15_s11  ;;  %s24_s14 = int_to_ptr.hbm [resolvable:$true] %s23_s14 }
   0x3   :  { %s220_s15 = smov [#allocation2]   ;;  %s221_s16 = smov [#allocation6]  }
   0x4   :  { %18 = dma.hbm_to_smem %s16_s11, 16, %s220_s15, [#allocation5]  }
   0x5   :  { %s25_s17 = sshll.u32 %s221_s16, 4  ;;  %s222_s18 = smov 512   ;;  %s26_s17 = int_to_ptr.vmem [resolvable:$true] %s25_s17 }
   0x6   :  { %s223_s19 = smov 32  }
   0x7   :  { %31 = dma.hbm_to_vmem [thread:$0]  %s24_s14, 1024, %s26_s17, [#allocation3], %s222_s18, %s222_s18, %s223_s19  }
   0x8   :  { %214 = dma.done.wait [#allocation5], 16  }
   0x9   :  { %215 = vsyncadd [#allocation5], 4294967280 }
   0xa   :  { %216 = dma.done.wait [#allocation3], 1024  }
   0xb   :  { %217 = vsyncadd [#allocation3], 4294966272 }
   0xc   :  { %40 = sfence }
   0xd   :  { %s41_s0 = sld [smem:[#allocation2]]  ;;  %v44_v0 = vld [vmem:[#allocation6] sm:$0xff]  ;;  %v45_v1 = vld [vmem:[#allocation6 + $0x8] sm:$0xff]  ;;  %v46_v2 = vld [vmem:[#allocation6 + $0x10] sm:$0xff]  ;;  %s224_s21 = smov [#allocation7]  }
   0xe   :  { %s131_s20 = sld [smem:[#allocation2 + $0x1]]  ;;  %v47_v3 = vld [vmem:[#allocation6 + $0x18] sm:$0xff]  ;;  %v48_v4 = vld [vmem:[#allocation6 + $0x20] sm:$0xf]  ;;  %v49_v5 = vld [vmem:[#allocation6 + $0x28] sm:$0xf] }
   0xf   :  { %v50_v7 = vld [vmem:[#allocation6 + $0x30] sm:$0xf]  ;;  %v51_v11 = vld [vmem:[#allocation6 + $0x38] sm:$0xf]  ;;  %s132_s1 = sld [smem:[#allocation2 + $0x2]]  ;;  %s115_s22 = sshll.u32 %s224_s21, 4  ;;  %s116_s22 = int_to_ptr.vmem [resolvable:$true] %s115_s22 }
  0x10   :  { %s117_s25 = sshll.u32 %s257_s2, 4  ;;  %s118_s25 = int_to_ptr.hbm [resolvable:$true] %s117_s25 }
  0x13   :  { %v52_v6 = vstv %s41_s0 }
  0x14   :  { %v53_v8 = vsub.f32 %v44_v0, %v52_v6  ;;  %v54_v9 = vsub.f32 %v45_v1, %v52_v6  ;;  %v55_v10 = vsub.f32 %v46_v2, %v52_v6  ;;  %v69_v12 = vstv %s131_s20 }
  0x15   :  { %v56_v13 = vsub.f32 %v47_v3, %v52_v6  ;;  %v57_v14 = vsub.f32 %v48_v4, %v52_v6  ;;  %v58_v15 = vsub.f32 %v49_v5, %v52_v6  ;;  %v59_v19 = vsub.f32 %v50_v7, %v52_v6 }
  0x16   :  { %v61_v16 = vmul.f32 %v53_v8, %v53_v8  ;;  %v62_v17 = vmul.f32 %v54_v9, %v54_v9  ;;  %v63_v18 = vmul.f32 %v55_v10, %v55_v10  ;;  %v60_v23 = vsub.f32 %v51_v11, %v52_v6 }
  0x17   :  { %v64_v20 = vmul.f32 %v56_v13, %v56_v13  ;;  %v65_v21 = vmul.f32 %v57_v14, %v57_v14  ;;  %v66_v22 = vmul.f32 %v58_v15, %v58_v15  ;;  %v67_v27 = vmul.f32 %v59_v19, %v59_v19 }
  0x18   :  { %v70_v24 = vmul.f32 %v69_v12, %v61_v16  ;;  %v71_v25 = vmul.f32 %v69_v12, %v62_v17  ;;  %v72_v26 = vmul.f32 %v69_v12, %v63_v18  ;;  %v68_v31 = vmul.f32 %v60_v23, %v60_v23 }
  0x19   :  { %v73_v28 = vmul.f32 %v69_v12, %v64_v20  ;;  %v74_v29 = vmul.f32 %v69_v12, %v65_v21  ;;  %v75_v30 = vmul.f32 %v69_v12, %v66_v22  ;;  %v76_v35 = vmul.f32 %v69_v12, %v67_v27 }
  0x1a   :  { %v78_v32 = vmul.f32 1.442695, %v70_v24  ;;  %v80_v33 = vmul.f32 1.442695, %v71_v25  ;;  %v82_v34 = vmul.f32 1.442695, %v72_v26  ;;  %v77_v37 = vmul.f32 %v69_v12, %v68_v31 }
  0x1b   :  { %v84_v36 = vmul.f32 1.442695, %v73_v28  ;;  %v86_v38 = vmul.f32 1.442695, %v74_v29  ;;  %v88_v39 = vmul.f32 1.442695, %v75_v30  ;;  %v94_v42 = vstv %s132_s1 }
  0x1c   :  { %138 = vpow2.f32 %v78_v32  ;;  %v90_v40 = vmul.f32 1.442695, %v76_v35  ;;  %v92_v41 = vmul.f32 1.442695, %v77_v37 }
  0x1d   :  { %140 = vpow2.f32 %v80_v33 }
  0x1e   :  { %142 = vpow2.f32 %v82_v34 }
  0x1f   :  { %144 = vpow2.f32 %v84_v36 }
  0x20   :  { %146 = vpow2.f32 %v86_v38 }
  0x21   :  { %148 = vpow2.f32 %v88_v39 }
  0x22   :  { %v139_v43 = vpop.eup %138  ;;  %150 = vpow2.f32 %v90_v40 }
  0x23   :  { %v141_v44 = vpop.eup %140  ;;  %v95_v45 = vmul.f32 %v139_v43, %v94_v42  ;;  %152 = vpow2.f32 %v92_v41 }
  0x24   :  { %v143_v46 = vpop.eup %142  ;;  %v96_v47 = vmul.f32 %v141_v44, %v94_v42 }
  0x25   :  { %v145_v48 = vpop.eup %144  ;;  %103 = vst [vmem:[#allocation7] sm:$0xff] %v95_v45  ;;  %v97_v49 = vmul.f32 %v143_v46, %v94_v42 }
  0x26   :  { %v147_v50 = vpop.eup %146  ;;  %104 = vst [vmem:[#allocation7 + $0x8] sm:$0xff] %v96_v47  ;;  %v98_v51 = vmul.f32 %v145_v48, %v94_v42 }
  0x27   :  { %v149_v52 = vpop.eup %148  ;;  %105 = vst [vmem:[#allocation7 + $0x10] sm:$0xff] %v97_v49  ;;  %v99_v53 = vmul.f32 %v147_v50, %v94_v42 }
  0x28   :  { %v151_v54 = vpop.eup %150  ;;  %106 = vst [vmem:[#allocation7 + $0x18] sm:$0xff] %v98_v51  ;;  %v100_v55 = vmul.f32 %v149_v52, %v94_v42 }
  0x29   :  { %v153_v56 = vpop.eup %152  ;;  %107 = vst [vmem:[#allocation7 + $0x20] sm:$0xf] %v99_v53  ;;  %v101_v57 = vmul.f32 %v151_v54, %v94_v42 }
  0x2a   :  { %108 = vst [vmem:[#allocation7 + $0x28] sm:$0xf] %v100_v55  ;;  %v102_v58 = vmul.f32 %v153_v56, %v94_v42 }
  0x2b   :  { %109 = vst [vmem:[#allocation7 + $0x30] sm:$0xf] %v101_v57 }
  0x2c   :  { %110 = vst [vmem:[#allocation7 + $0x38] sm:$0xf] %v102_v58 }
  0x2d   :  { %123 = dma.vmem_to_hbm [thread:$0]  %s116_s22, 1024, %s118_s25, [#allocation4], %s222_s18, %s222_s18, %s223_s19  }
  0x2e   :  { %218 = dma.done.wait [#allocation4], 1024  }
  0x2f   :  { %219 = vsyncadd [#allocation4], 4294966272 }
  0x30   :  { %128 = vsyncpa [#allocation3], 1 }
  0x31   :  { %129 = vsyncpa [#allocation4], 1 }
  0x32   :  { %130 = vsyncpa [#allocation5], 1 }

</bundles_post_ra>
